<compile_context>
chip_gen: v7x
topology: tpu7x:2x2x1
jax: 0.10.0
libtpu: 0.0.40
codegen_flags: <defaults>
</compile_context>

<pallas_src>
import functools

import jax
import jax.numpy as jnp
from jax.experimental import pallas as pl
from jax.experimental.pallas import tpu as pltpu


def bingram_block_kernel(x_ref, wqkv_ref, ln_ref,
                         w1_ref, b1_ref, w2_ref, b2_ref,
                         wlm_ref, blm_ref, out_ref):
    """Pre-norm attention block + FFN + lm_head for the whole (B, T) batch."""
    x = x_ref[...]                                  # (B, T, C) f32
    B, T, C = x.shape
    V = out_ref.shape[-1]
    ln = ln_ref[...]                                # (4, C): ln1_g, ln1_b, ln2_g, ln2_b

    def layer_norm(h, g, b):                        # f32 math, matches nn.LayerNorm(eps=1e-5)
        mu = jnp.mean(h, axis=-1, keepdims=True)
        var = jnp.mean(jnp.square(h - mu), axis=-1, keepdims=True)
        return (h - mu) * jax.lax.rsqrt(var + 1e-5) * g + b

    # ---- self-attention head on ln1(x) ----
    xn = layer_norm(x, ln[0:1], ln[1:2])            # (B, T, C)
    qkv = jnp.dot(xn.reshape(B * T, C).astype(jnp.bfloat16),
                  wqkv_ref[...],                    # (C, 3C) bf16, scale folded into Wq
                  preferred_element_type=jnp.float32)
    qkv = qkv.reshape(B, T, 3 * C)
    q = qkv[:, :, :C]
    k = qkv[:, :, C:2 * C]
    v = qkv[:, :, 2 * C:]

    # scale (C**-0.5) already folded into Wq at init time; k consumed untransposed.
    wei = jnp.einsum('bqc,bkc->bqk',
                     q.astype(jnp.bfloat16), k.astype(jnp.bfloat16),
                     preferred_element_type=jnp.float32)        # (B, T, T)
    row = jax.lax.broadcasted_iota(jnp.int32, (T, T), 0)
    col = jax.lax.broadcasted_iota(jnp.int32, (T, T), 1)
    wei = jnp.where(col <= row, wei, -jnp.inf)                  # causal (tril) mask
    wei = wei - jnp.max(wei, axis=-1, keepdims=True)
    p = jnp.exp(wei)
    p = p * pl.reciprocal(jnp.sum(p, axis=-1, keepdims=True), approx=True)
    # TODO(synk): nn.Dropout(0.1) on attention weights treated as identity (eval mode).
    att = jnp.einsum('bqk,bkc->bqc',
                     p.astype(jnp.bfloat16), v.astype(jnp.bfloat16),
                     preferred_element_type=jnp.float32)
    x = x + att                                                  # residual 1

    # ---- feed-forward on ln2(x) ----
    xn2 = layer_norm(x, ln[2:3], ln[3:4]).reshape(B * T, C)
    h = jnp.dot(xn2.astype(jnp.bfloat16), w1_ref[...],
                preferred_element_type=jnp.float32) + b1_ref[...]
    h = jnp.maximum(h, 0.0)                                      # ReLU
    ff = jnp.dot(h.astype(jnp.bfloat16), w2_ref[...],
                 preferred_element_type=jnp.float32) + b2_ref[...]
    # TODO(synk): nn.Dropout(0.1) after the FFN treated as identity (eval mode).
    x = x + ff.reshape(B, T, C)                                  # residual 2

    # ---- lm head ----
    logits = jnp.dot(x.reshape(B * T, C).astype(jnp.bfloat16), wlm_ref[...],
                     preferred_element_type=jnp.float32) + blm_ref[...]
    out_ref[...] = logits.reshape(B, T, V)


def bingram_forward(idx, params):
    """Full forward: embedding gathers in plain JAX, fused block+head in Pallas."""
    B, T = idx.shape
    V = params["lm_w"].shape[1]

    tok_emb = params["tok_emb"][idx]                 # (B, T, C)
    pos_emb = params["pos_emb"][:T]                  # (T, C)
    x = tok_emb + pos_emb                            # (B, T, C) f32

    vmem = functools.partial(pl.BlockSpec, memory_space=pltpu.MemorySpace.VMEM)

    logits = pl.pallas_call(
        bingram_block_kernel,
        out_shape=jax.ShapeDtypeStruct((B, T, V), jnp.float32),
        in_specs=[vmem() for _ in range(9)],
        out_specs=vmem(),
    )(
        x,
        params["wqkv"], params["ln"],
        params["ff_w1"], params["ff_b1"], params["ff_w2"], params["ff_b2"],
        params["lm_w"], params["lm_b"],
    )
    loss = None  # targets=None path of the PyTorch module
    return logits, loss


def init_params(key, vocab_size, n_embd, block_size):
    ks = jax.random.split(key, 12)
    s = 0.02
    C, V = n_embd, vocab_size

    wq = jax.random.normal(ks[2], (C, C), jnp.float32) * s
    wk = jax.random.normal(ks[3], (C, C), jnp.float32) * s
    wv = jax.random.normal(ks[4], (C, C), jnp.float32) * s
    # Fuse QKV and fold the attention scale (C**-0.5) into Wq (one-time transform).
    wqkv = jnp.concatenate([wq * (C ** -0.5), wk, wv], axis=1)   # (C, 3C)

    ln = jnp.stack([jnp.ones((C,), jnp.float32),   # ln1 gamma
                    jnp.zeros((C,), jnp.float32),  # ln1 beta
                    jnp.ones((C,), jnp.float32),   # ln2 gamma
                    jnp.zeros((C,), jnp.float32)]) # ln2 beta

    return {
        "tok_emb": jax.random.normal(ks[0], (V, C), jnp.float32) * s,
        "pos_emb": jax.random.normal(ks[1], (block_size, C), jnp.float32) * s,
        # Matmul weights stored pre-transposed (in, out) and in bf16 for the MXU.
        "wqkv": wqkv.astype(jnp.bfloat16),
        "ln": ln,
        "ff_w1": (jax.random.normal(ks[5], (C, 4 * C), jnp.float32) * s).astype(jnp.bfloat16),
        "ff_b1": jax.random.normal(ks[6], (1, 4 * C), jnp.float32) * s,
        "ff_w2": (jax.random.normal(ks[7], (4 * C, C), jnp.float32) * s).astype(jnp.bfloat16),
        "ff_b2": jax.random.normal(ks[8], (1, C), jnp.float32) * s,
        "lm_w": (jax.random.normal(ks[9], (C, V), jnp.float32) * s).astype(jnp.bfloat16),
        "lm_b": jax.random.normal(ks[10], (1, V), jnp.float32) * s,
    }


if __name__ == "__main__":
    vocab_size = 128
    n_embd = 32
    block_size = 8
    B, T = 2, 8

    key = jax.random.PRNGKey(0)
    pkey, ikey = jax.random.split(key)
    params = init_params(pkey, vocab_size, n_embd, block_size)
    idx = jax.random.randint(ikey, (B, T), 0, vocab_size, dtype=jnp.int32)

    fwd = jax.jit(bingram_forward)
    logits, loss = fwd(idx, params)
    logits = jax.block_until_ready(logits)

    assert logits.shape == (B, T, vocab_size)
    assert loss is None
    assert bool(jnp.all(jnp.isfinite(logits)))
    print("KERNEL_OK")
</pallas_src>

<mosaic_0001>
module attributes {stable_mosaic.version = 11 : i64} {
  func.func @bingram_block_kernel(%arg0: memref<2x8x32xf32, #tpu.memory_space<vmem>>, %arg1: memref<32x96xbf16, #tpu.memory_space<vmem>>, %arg2: memref<4x32xf32, #tpu.memory_space<vmem>>, %arg3: memref<32x128xbf16, #tpu.memory_space<vmem>>, %arg4: memref<1x128xf32, #tpu.memory_space<vmem>>, %arg5: memref<128x32xbf16, #tpu.memory_space<vmem>>, %arg6: memref<1x32xf32, #tpu.memory_space<vmem>>, %arg7: memref<32x128xbf16, #tpu.memory_space<vmem>>, %arg8: memref<1x128xf32, #tpu.memory_space<vmem>>, %arg9: memref<2x8x128xf32, #tpu.memory_space<vmem>>) attributes {dimension_semantics = [], scalar_prefetch = 0 : i64, scratch_operands = 0 : i64, tpu.core_type = #tpu.core_type<tc>} {
    %c0 = arith.constant 0 : index
    %c0_0 = arith.constant 0 : index
    %c0_1 = arith.constant 0 : index
    %0 = vector.load %arg0[%c0, %c0_0, %c0_1] : memref<2x8x32xf32, #tpu.memory_space<vmem>>, vector<2x8x32xf32>
    %c0_2 = arith.constant 0 : index
    %c0_3 = arith.constant 0 : index
    %1 = vector.load %arg2[%c0_2, %c0_3] : memref<4x32xf32, #tpu.memory_space<vmem>>, vector<4x32xf32>
    %2 = vector.extract_strided_slice %1 {offsets = [0, 0], sizes = [1, 32], strides = [1, 1]} : vector<4x32xf32> to vector<1x32xf32>
    %3 = vector.extract_strided_slice %1 {offsets = [1, 0], sizes = [1, 32], strides = [1, 1]} : vector<4x32xf32> to vector<1x32xf32>
    %cst = arith.constant dense<0.000000e+00> : vector<2x8xf32>
    %4 = vector.multi_reduction <add>, %0, %cst [2] : vector<2x8x32xf32> to vector<2x8xf32>
    %5 = vector.shape_cast %4 : vector<2x8xf32> to vector<2x8x1xf32>
    %cst_4 = arith.constant 3.200000e+01 : f32
    %6 = vector.broadcast %cst_4 : f32 to vector<2x8x1xf32>
    %7 = arith.divf %5, %6 : vector<2x8x1xf32>
    %8 = vector.broadcast %7 : vector<2x8x1xf32> to vector<2x8x32xf32>
    %9 = arith.subf %0, %8 : vector<2x8x32xf32>
    %10 = arith.mulf %9, %9 : vector<2x8x32xf32>
    %cst_5 = arith.constant dense<0.000000e+00> : vector<2x8xf32>
    %11 = vector.multi_reduction <add>, %10, %cst_5 [2] : vector<2x8x32xf32> to vector<2x8xf32>
    %12 = vector.shape_cast %11 : vector<2x8xf32> to vector<2x8x1xf32>
    %cst_6 = arith.constant 3.200000e+01 : f32
    %13 = vector.broadcast %cst_6 : f32 to vector<2x8x1xf32>
    %14 = arith.divf %12, %13 : vector<2x8x1xf32>
    %15 = vector.broadcast %7 : vector<2x8x1xf32> to vector<2x8x32xf32>
    %16 = arith.subf %0, %15 : vector<2x8x32xf32>
    %cst_7 = arith.constant 9.99999974E-6 : f32
    %17 = vector.broadcast %cst_7 : f32 to vector<2x8x1xf32>
    %18 = arith.addf %14, %17 : vector<2x8x1xf32>
    %19 = math.rsqrt %18 : vector<2x8x1xf32>
    %20 = vector.broadcast %19 : vector<2x8x1xf32> to vector<2x8x32xf32>
    %21 = arith.mulf %16, %20 : vector<2x8x32xf32>
    %22 = vector.shape_cast %2 : vector<1x32xf32> to vector<1x1x32xf32>
    %23 = vector.broadcast %22 : vector<1x1x32xf32> to vector<2x8x32xf32>
    %24 = arith.mulf %21, %23 : vector<2x8x32xf32>
    %25 = vector.shape_cast %3 : vector<1x32xf32> to vector<1x1x32xf32>
    %26 = vector.broadcast %25 : vector<1x1x32xf32> to vector<2x8x32xf32>
    %27 = arith.addf %24, %26 : vector<2x8x32xf32>
    %28 = vector.shape_cast %27 : vector<2x8x32xf32> to vector<16x32xf32>
    %29 = arith.truncf %28 : vector<16x32xf32> to vector<16x32xbf16>
    %c0_8 = arith.constant 0 : index
    %c0_9 = arith.constant 0 : index
    %30 = vector.load %arg1[%c0_8, %c0_9] : memref<32x96xbf16, #tpu.memory_space<vmem>>, vector<32x96xbf16>
    %cst_10 = arith.constant dense<0.000000e+00> : vector<16x96xf32>
    %31 = tpu.matmul %29, %30, %cst_10 {dimension_numbers = #tpu.dot_dimension_numbers<[1], [0], [0], [1], [0, 0, 1, 1], [], []>} : vector<16x32xbf16>, vector<32x96xbf16>, vector<16x96xf32> -> vector<16x96xf32>
    %32 = vector.shape_cast %31 : vector<16x96xf32> to vector<2x8x96xf32>
    %33 = vector.extract_strided_slice %32 {offsets = [0, 0, 0], sizes = [2, 8, 32], strides = [1, 1, 1]} : vector<2x8x96xf32> to vector<2x8x32xf32>
    %34 = vector.extract_strided_slice %32 {offsets = [0, 0, 32], sizes = [2, 8, 32], strides = [1, 1, 1]} : vector<2x8x96xf32> to vector<2x8x32xf32>
    %35 = vector.extract_strided_slice %32 {offsets = [0, 0, 64], sizes = [2, 8, 32], strides = [1, 1, 1]} : vector<2x8x96xf32> to vector<2x8x32xf32>
    %36 = arith.truncf %33 : vector<2x8x32xf32> to vector<2x8x32xbf16>
    %37 = arith.truncf %34 : vector<2x8x32xf32> to vector<2x8x32xbf16>
    "tpu.trace_start"() <{level = 10 : i32, message = "bqc,bkc->bqk"}> : () -> ()
    %cst_11 = arith.constant dense<0.000000e+00> : vector<2x8x8xf32>
    %38 = tpu.matmul %36, %37, %cst_11 {dimension_numbers = #tpu.dot_dimension_numbers<[2], [2], [1], [1], [0, 0, 0, 1, 1, 1], [0], [0]>} : vector<2x8x32xbf16>, vector<2x8x32xbf16>, vector<2x8x8xf32> -> vector<2x8x8xf32>
    "tpu.trace_stop"() : () -> ()
    %39 = tpu.iota {dimensions = array<i32: 0>} : vector<8x8xi32>
    %40 = tpu.iota {dimensions = array<i32: 1>} : vector<8x8xi32>
    %41 = arith.cmpi sle, %40, %39 : vector<8x8xi32>
    %cst_12 = arith.constant 0xFF800000 : f32
    %42 = vector.shape_cast %41 : vector<8x8xi1> to vector<1x8x8xi1>
    %43 = vector.broadcast %42 : vector<1x8x8xi1> to vector<2x8x8xi1>
    %44 = vector.broadcast %cst_12 : f32 to vector<2x8x8xf32>
    %45 = arith.select %43, %38, %44 : vector<2x8x8xi1>, vector<2x8x8xf32>
    %cst_13 = arith.constant dense<0xFF800000> : vector<2x8xf32>
    %46 = vector.multi_reduction <maximumf>, %45, %cst_13 [2] : vector<2x8x8xf32> to vector<2x8xf32>
    %47 = vector.shape_cast %46 : vector<2x8xf32> to vector<2x8x1xf32>
    %48 = vector.broadcast %47 : vector<2x8x1xf32> to vector<2x8x8xf32>
    %49 = arith.subf %45, %48 : vector<2x8x8xf32>
    %50 = math.exp %49 : vector<2x8x8xf32>
    %cst_14 = arith.constant dense<0.000000e+00> : vector<2x8xf32>
    %51 = vector.multi_reduction <add>, %50, %cst_14 [2] : vector<2x8x8xf32> to vector<2x8xf32>
    %52 = vector.shape_cast %51 : vector<2x8xf32> to vector<2x8x1xf32>
    %53 = tpu.reciprocal %52 {approx = true} : vector<2x8x1xf32> -> vector<2x8x1xf32>
    %54 = vector.broadcast %53 : vector<2x8x1xf32> to vector<2x8x8xf32>
    %55 = arith.mulf %50, %54 : vector<2x8x8xf32>
    %56 = arith.truncf %55 : vector<2x8x8xf32> to vector<2x8x8xbf16>
    %57 = arith.truncf %35 : vector<2x8x32xf32> to vector<2x8x32xbf16>
    "tpu.trace_start"() <{level = 10 : i32, message = "bqk,bkc->bqc"}> : () -> ()
    %cst_15 = arith.constant dense<0.000000e+00> : vector<2x8x32xf32>
    %58 = tpu.matmul %56, %57, %cst_15 {dimension_numbers = #tpu.dot_dimension_numbers<[2], [1], [1], [2], [0, 0, 0, 1, 1, 2], [0], [0]>} : vector<2x8x8xbf16>, vector<2x8x32xbf16>, vector<2x8x32xf32> -> vector<2x8x32xf32>
    "tpu.trace_stop"() : () -> ()
    %59 = arith.addf %0, %58 : vector<2x8x32xf32>
    %60 = vector.extract_strided_slice %1 {offsets = [2, 0], sizes = [1, 32], strides = [1, 1]} : vector<4x32xf32> to vector<1x32xf32>
    %61 = vector.extract_strided_slice %1 {offsets = [3, 0], sizes = [1, 32], strides = [1, 1]} : vector<4x32xf32> to vector<1x32xf32>
    %cst_16 = arith.constant dense<0.000000e+00> : vector<2x8xf32>
    %62 = vector.multi_reduction <add>, %59, %cst_16 [2] : vector<2x8x32xf32> to vector<2x8xf32>
    %63 = vector.shape_cast %62 : vector<2x8xf32> to vector<2x8x1xf32>
    %cst_17 = arith.constant 3.200000e+01 : f32
    %64 = vector.broadcast %cst_17 : f32 to vector<2x8x1xf32>
    %65 = arith.divf %63, %64 : vector<2x8x1xf32>
    %66 = vector.broadcast %65 : vector<2x8x1xf32> to vector<2x8x32xf32>
    %67 = arith.subf %59, %66 : vector<2x8x32xf32>
    %68 = arith.mulf %67, %67 : vector<2x8x32xf32>
    %cst_18 = arith.constant dense<0.000000e+00> : vector<2x8xf32>
    %69 = vector.multi_reduction <add>, %68, %cst_18 [2] : vector<2x8x32xf32> to vector<2x8xf32>
    %70 = vector.shape_cast %69 : vector<2x8xf32> to vector<2x8x1xf32>
    %cst_19 = arith.constant 3.200000e+01 : f32
    %71 = vector.broadcast %cst_19 : f32 to vector<2x8x1xf32>
    %72 = arith.divf %70, %71 : vector<2x8x1xf32>
    %73 = vector.broadcast %65 : vector<2x8x1xf32> to vector<2x8x32xf32>
    %74 = arith.subf %59, %73 : vector<2x8x32xf32>
    %cst_20 = arith.constant 9.99999974E-6 : f32
    %75 = vector.broadcast %cst_20 : f32 to vector<2x8x1xf32>
    %76 = arith.addf %72, %75 : vector<2x8x1xf32>
    %77 = math.rsqrt %76 : vector<2x8x1xf32>
    %78 = vector.broadcast %77 : vector<2x8x1xf32> to vector<2x8x32xf32>
    %79 = arith.mulf %74, %78 : vector<2x8x32xf32>
    %80 = vector.shape_cast %60 : vector<1x32xf32> to vector<1x1x32xf32>
    %81 = vector.broadcast %80 : vector<1x1x32xf32> to vector<2x8x32xf32>
    %82 = arith.mulf %79, %81 : vector<2x8x32xf32>
    %83 = vector.shape_cast %61 : vector<1x32xf32> to vector<1x1x32xf32>
    %84 = vector.broadcast %83 : vector<1x1x32xf32> to vector<2x8x32xf32>
    %85 = arith.addf %82, %84 : vector<2x8x32xf32>
    %86 = vector.shape_cast %85 : vector<2x8x32xf32> to vector<16x32xf32>
    %87 = arith.truncf %86 : vector<16x32xf32> to vector<16x32xbf16>
    %c0_21 = arith.constant 0 : index
    %c0_22 = arith.constant 0 : index
    %88 = vector.load %arg3[%c0_21, %c0_22] : memref<32x128xbf16, #tpu.memory_space<vmem>>, vector<32x128xbf16>
    %cst_23 = arith.constant dense<0.000000e+00> : vector<16x128xf32>
    %89 = tpu.matmul %87, %88, %cst_23 {dimension_numbers = #tpu.dot_dimension_numbers<[1], [0], [0], [1], [0, 0, 1, 1], [], []>} : vector<16x32xbf16>, vector<32x128xbf16>, vector<16x128xf32> -> vector<16x128xf32>
    %c0_24 = arith.constant 0 : index
    %c0_25 = arith.constant 0 : index
    %90 = vector.load %arg4[%c0_24, %c0_25] : memref<1x128xf32, #tpu.memory_space<vmem>>, vector<1x128xf32>
    %91 = vector.broadcast %90 : vector<1x128xf32> to vector<16x128xf32>
    %92 = arith.addf %89, %91 : vector<16x128xf32>
    %cst_26 = arith.constant 0.000000e+00 : f32
    %93 = vector.broadcast %cst_26 : f32 to vector<16x128xf32>
    %94 = arith.maximumf %92, %93 : vector<16x128xf32>
    %95 = arith.truncf %94 : vector<16x128xf32> to vector<16x128xbf16>
    %c0_27 = arith.constant 0 : index
    %c0_28 = arith.constant 0 : index
    %96 = vector.load %arg5[%c0_27, %c0_28] : memref<128x32xbf16, #tpu.memory_space<vmem>>, vector<128x32xbf16>
    %cst_29 = arith.constant dense<0.000000e+00> : vector<16x32xf32>
    %97 = tpu.matmul %95, %96, %cst_29 {dimension_numbers = #tpu.dot_dimension_numbers<[1], [0], [0], [1], [0, 0, 1, 1], [], []>} : vector<16x128xbf16>, vector<128x32xbf16>, vector<16x32xf32> -> vector<16x32xf32>
    %c0_30 = arith.constant 0 : index
    %c0_31 = arith.constant 0 : index
    %98 = vector.load %arg6[%c0_30, %c0_31] : memref<1x32xf32, #tpu.memory_space<vmem>>, vector<1x32xf32>
    %99 = vector.broadcast %98 : vector<1x32xf32> to vector<16x32xf32>
    %100 = arith.addf %97, %99 : vector<16x32xf32>
    %101 = vector.shape_cast %100 : vector<16x32xf32> to vector<2x8x32xf32>
    %102 = arith.addf %59, %101 : vector<2x8x32xf32>
    %103 = vector.shape_cast %102 : vector<2x8x32xf32> to vector<16x32xf32>
    %104 = arith.truncf %103 : vector<16x32xf32> to vector<16x32xbf16>
    %c0_32 = arith.constant 0 : index
    %c0_33 = arith.constant 0 : index
    %105 = vector.load %arg7[%c0_32, %c0_33] : memref<32x128xbf16, #tpu.memory_space<vmem>>, vector<32x128xbf16>
    %cst_34 = arith.constant dense<0.000000e+00> : vector<16x128xf32>
    %106 = tpu.matmul %104, %105, %cst_34 {dimension_numbers = #tpu.dot_dimension_numbers<[1], [0], [0], [1], [0, 0, 1, 1], [], []>} : vector<16x32xbf16>, vector<32x128xbf16>, vector<16x128xf32> -> vector<16x128xf32>
    %c0_35 = arith.constant 0 : index
    %c0_36 = arith.constant 0 : index
    %107 = vector.load %arg8[%c0_35, %c0_36] : memref<1x128xf32, #tpu.memory_space<vmem>>, vector<1x128xf32>
    %108 = vector.broadcast %107 : vector<1x128xf32> to vector<16x128xf32>
    %109 = arith.addf %106, %108 : vector<16x128xf32>
    %110 = vector.shape_cast %109 : vector<16x128xf32> to vector<2x8x128xf32>
    %c0_37 = arith.constant 0 : index
    %c0_38 = arith.constant 0 : index
    %c0_39 = arith.constant 0 : index
    %111 = vector.load %arg9[%c0_37, %c0_38, %c0_39] : memref<2x8x128xf32, #tpu.memory_space<vmem>>, vector<2x8x128xf32>
    tpu.vector_store %arg9[%c0_37, %c0_38, %c0_39], %110 {strides = array<i32>} : memref<2x8x128xf32, #tpu.memory_space<vmem>>, vector<2x8x128xf32>,
    return
  }
}

</mosaic_0001>

<bundles_post_ra>
// kernel: bingram_forward.1
= control target key start
LH: loop header
LB: loop body
LE: loop exit
PB: predicated region body
PF: predicated region fallthrough
CT: control target
= control target key end

     0   :  { %vm37_vm0 = vcmask 261120   ;;  %s1076_s0 = inlined_call_operand.vmem [shape: f32[2,8,32], index: 0, kind: input, shape index: {}]   ;;  %s1077_s1 = inlined_call_operand.vmem [shape: bf16[32,96], index: 1, kind: input, shape index: {}]   ;;  %s1078_s2 = inlined_call_operand.vmem [shape: f32[4,32], index: 2, kind: input, shape index: {}]   ;;  %s1079_s3 = inlined_call_operand.vmem [shape: bf16[32,128], index: 3, kind: input, shape index: {}]   ;;  %s1080_s4 = inlined_call_operand.vmem [shape: f32[1,128], index: 4, kind: input, shape index: {}]   ;;  %s1081_s5 = inlined_call_operand.vmem [shape: bf16[128,32], index: 5, kind: input, shape index: {}]   ;;  %s1082_s6 = inlined_call_operand.vmem [shape: f32[1,32], index: 6, kind: input, shape index: {}]   ;;  %s1083_s7 = inlined_call_operand.vmem [shape: bf16[32,128], index: 7, kind: input, shape index: {}]   ;;  %s1084_s8 = inlined_call_operand.vmem [shape: f32[1,128], index: 8, kind: input, shape index: {}]   ;;  %s1085_s9 = inlined_call_operand.hbm [shape: f32[2,8,128], index: 9, kind: output, shape index: {}]  }
   0x1   :  { %v919_v0 = vld [vmem:[%s1076_s0] sm:$0xff]  ;;  %v924_v1 = vld [vmem:[%s1076_s0 + $0x8] sm:$0xff] }
   0x2   :  { %v38_v2 = vsel %vm37_vm0, %v919_v0, 0.0  ;;  %v41_v3 = vsel %vm37_vm0, %v924_v1, 0.0 }
   0x3   :  { %39 = vadd.xlane.f32.xlu0 %v38_v2 }
   0x7   :  { %42 = vadd.xlane.f32.xlu0 %v41_v3 }
   0x8   :  { %14 = vsyncpa [#allocation3], 0  ;;  %v805_v14 = vld [vmem:[%s1077_s1] sm:$0xff]   ;;  %v859_v15 = vmov 0.0   ;;  %v806_v16 = vld [vmem:[%s1077_s1 + $0x8] sm:$0xff]   ;;  %vm860_vm1 = vmmov 0   ;;  %v65_v21 = vlaneseq }
   0x9   :  { %730 = vmatprep.subr.bf16.mxu1 %v859_v15  ;;  %744 = vmatprep.subr.bf16.mxu0 %v859_v15  ;;  %v954_v26 = vld [vmem:[%s1078_s2] sm:$0xf]  ;;  %s861_s2 = smov 96   ;;  %vm247_vm3 = vcmask 64512   ;;  %s862_s17 = smov 64   ;;  %vm277_vm4 = vcmask 1043456  }
   0xa   :  { %731 = vmatpush3.bf16.msra.mxu1 %v805_v14  ;;  %734 = vmatprep.mubr.msk.bf16.mxu1 %vm860_vm1, %v859_v15  ;;  %v948_v24 = vshrl.u32 %v65_v21, 7  ;;  %v241_v49 = vand.u32 127, %v65_v21  ;;  %s863_s20 = smov [#allocation2]  }
   0xb   :  { %732 = vmatprep.subr.bf16.mxu1 %v859_v15  ;;  %746 = vmatprep.mubr.msk.bf16.mxu0 %vm860_vm1, %v859_v15  ;;  %s669_s21 = sshll.u32 %s863_s20, 4  ;;  %s670_s21 = int_to_ptr.vmem [resolvable:$true] %s669_s21 }
   0xc   :  { %v67_v25 = vsub.s32 0, %v948_v24  ;;  %v73_v30 = vsub.s32 1, %v948_v24  ;;  %vm242_vm2 = vcmp.le.s32.totalorder %v241_v49, %v948_v24  ;;  %v811_v49 = vld [vmem:[%s1081_s5 + $0x10] sm:$0xff]   ;;  %p840_p1 = scmp.lt.s32.totalorder %s670_s21, %s670_s21 }
   0xe   :  { %733 = vmatpush3.bf16.msra.mxu1 %v806_v16  ;;  %v68_v29 = vrot.slane %v954_v26, %v67_v25  ;;  %v74_v34 = vrot.slane %v954_v26, %v73_v30 }
   0xf   :  { %738 = vmatprep.subr.bf16.mxu1 %v859_v15 }
  0x90   :  { %v40_v4 = vpop.xlane.xlu0 %39 }
  0x91   :  { %v45_v5 = vmul.f32 0.03125, %v40_v4 }
  0x93   :  { %v47_v6 = vsub.f32 %v919_v0, %v45_v5 }
  0x94   :  { %v43_v7 = vpop.xlane.xlu0 %42 }
  0x95   :  { %v46_v8 = vmul.f32 0.03125, %v43_v7  ;;  %v49_v9 = vmul.f32 %v47_v6, %v47_v6 }
  0x97   :  { %v48_v10 = vsub.f32 %v924_v1, %v46_v8  ;;  %v51_v11 = vsel %vm37_vm0, %v49_v9, 0.0 }
  0x98   :  { %52 = vadd.xlane.f32.xlu1 %v51_v11 }
  0x99   :  { %v50_v12 = vmul.f32 %v48_v10, %v48_v10 }
  0x9b   :  { %v54_v13 = vsel %vm37_vm0, %v50_v12, 0.0 }
  0x9c   :  { %55 = vadd.xlane.f32.xlu1 %v54_v13 }
 0x125   :  { %v53_v17 = vpop.xlane.xlu1 %52 }
 0x126   :  { %v57_v18 = vmul.f32 0.03125, %v53_v17 }
 0x128   :  { %v59_v19 = vadd.f32 1e-05, %v57_v18 }
 0x129   :  { %v56_v20 = vpop.xlane.xlu1 %55 }
 0x12a   :  { %819 = vrsqrt.f32 %v59_v19  ;;  %v58_v22 = vmul.f32 0.03125, %v56_v20 }
 0x12c   :  { %v60_v23 = vadd.f32 1e-05, %v58_v22 }
 0x12e   :  { %821 = vrsqrt.f32 %v60_v23 }
 0x134   :  { %v820_v27 = vpop.eup %819 }
 0x135   :  { %v63_v28 = vmul.f32 %v820_v27, %v47_v6 }
 0x137   :  { %v69_v33 = vmul.f32 %v68_v29, %v63_v28 }
 0x138   :  { %v822_v31 = vpop.eup %821 }
 0x139   :  { %v64_v32 = vmul.f32 %v822_v31, %v48_v10  ;;  %v75_v36 = vadd.f32 %v74_v34, %v69_v33 }
 0x13b   :  { %v70_v35 = vmul.f32 %v68_v29, %v64_v32 }
 0x13d   :  { %v76_v37 = vadd.f32 %v74_v34, %v70_v35 }
 0x13f   :  { %v77_v38 = vpack.c.bf16 %v76_v37, %v75_v36 }
 0x141   :  { %735 = vmatmul.mubr.msk.bf16.vlgmr.msra.gmra.mrb[0].mxu1 %vm37_vm0, %v77_v38 }
 0x142   :  { %740 = vmatprep.mubr.msk.bf16.mxu1 %vm860_vm1, %v859_v15 }
 0x214   :  { %v131_v39 = vpop.f32.mrb[0].mxu1 }
 0x215   :  { %v138_v40 = vpack.c.bf16 %v131_v39, %v131_v39  ;;  %v736_v41 = vpop.f32.mrb[1].mxu1 }
 0x216   :  { %v134_v42 = vpop.f32.mrb[2].mxu1 }
 0x217   :  { %v139_v43 = vpack.c.bf16 %v134_v42, %v134_v42  ;;  %141 = vrot.lane.b32.xlu0 %v138_v40, %s861_s2  ;;  %v737_v44 = vpop.f32.mrb[3].mxu1 }
 0x219   :  { %190 = vrot.lane.b32.xlu1 %v139_v43, %s861_s2 }
 0x289   :  { %v142_v45 = vpop.permute.xlu0 %141 }
 0x28a   :  { %v147_v46 = vsel %vm37_vm0, %v142_v45, 0  ;;  %v807_v45 = vld [vmem:[%s1079_s3] sm:$0xff]  }
 0x28b   :  { %739 = vmatpush3.bf16.xpose.msra.mxu1 %v147_v46  ;;  %v191_v47 = vpop.permute.xlu1 %190  ;;  %v808_v46 = vld [vmem:[%s1079_s3 + $0x8] sm:$0xff]  }
 0x28c   :  { %v196_v48 = vsel %vm37_vm0, %v191_v47, 0  ;;  %750 = vmatprep.subr.bf16.mxu1 %v859_v15  ;;  %v809_v47 = vld [vmem:[%s1081_s5] sm:$0xff]  }
 0x28d   :  { %745 = vmatpush3.bf16.xpose.msra.mxu0 %v196_v48  ;;  %v810_v48 = vld [vmem:[%s1081_s5 + $0x8] sm:$0xff]  }
 0x28e   :  { %756 = vmatprep.subr.bf16.mxu0 %v859_v15 }
 0x292   :  { %741 = vmatmul.mubr.msk.bf16.vlgmr.msra.gmra.mrb[4].mxu1 %vm37_vm0, %v138_v40 }
 0x293   :  { %752 = vmatprep.mubr.msk.bf16.mxu1 %vm860_vm1, %v859_v15 }
 0x294   :  { %747 = vmatmul.mubr.msk.bf16.vlgmr.msra.gmra.mrb[0].mxu0 %vm37_vm0, %v139_v43 }
 0x295   :  { %758 = vmatprep.mubr.msk.bf16.mxu0 %vm860_vm1, %v859_v15 }
 0x365   :  { %v183_v50 = vpop.f32.mrb[4].mxu1 }
 0x366   :  { %v245_v51 = vsel %vm242_vm2, %v183_v50, -inf  ;;  %v742_v52 = vpop.f32.mrb[5].mxu1  ;;  %v812_v50 = vld [vmem:[%s1081_s5 + $0x18] sm:$0xff]  }
 0x367   :  { %v186_v53 = vpop.f32.mrb[6].mxu1  ;;  %v232_v54 = vpop.f32.mrb[0].mxu0  ;;  %v248_v55 = vsel %vm247_vm3, %v245_v51, -inf  ;;  %v814_v52 = vld [vmem:[%s1081_s5 + $0x28] sm:$0xff]  }
 0x368   :  { %v246_v56 = vsel %vm242_vm2, %v232_v54, -inf  ;;  %v748_v57 = vpop.f32.mrb[1].mxu0  ;;  %249 = vmax.xlane.f32.xlu1 %v248_v55  ;;  %v743_v58 = vpop.f32.mrb[7].mxu1 }
 0x369   :  { %v235_v59 = vpop.f32.mrb[2].mxu0  ;;  %v251_v60 = vsel %vm247_vm3, %v246_v56, -inf }
 0x36a   :  { %252 = vmax.xlane.f32.xlu0 %v251_v60  ;;  %v749_v61 = vpop.f32.mrb[3].mxu0  ;;  %v399_v59 = vsub.s32 2, %v948_v24 }
 0x36b   :  { %v405_v61 = vsub.s32 3, %v948_v24  ;;  %v815_v24 = vld [vmem:[%s1081_s5 + $0x30] sm:$0xff]  }
 0x36c   :  { %v400_v60 = vrot.slane %v954_v26, %v399_v59 }
 0x3f5   :  { %v250_v62 = vpop.xlane.xlu1 %249 }
 0x3f6   :  { %v254_v63 = vsub.f32 %v245_v51, %v250_v62  ;;  %v813_v51 = vld [vmem:[%s1081_s5 + $0x20] sm:$0xff]  }
 0x3f7   :  { %v253_v2 = vpop.xlane.xlu0 %252 }
 0x3f8   :  { %v256_v3 = vmul.f32 1.442695, %v254_v63  ;;  %v255_v4 = vsub.f32 %v246_v56, %v253_v2 }
 0x3fa   :  { %823 = vpow2.f32 %v256_v3  ;;  %v258_v5 = vmul.f32 1.442695, %v255_v4 }
 0x3fc   :  { %825 = vpow2.f32 %v258_v5  ;;  %v406_v5 = vrot.slane %v954_v26, %v405_v61  ;;  %v816_v26 = vld [vmem:[%s1081_s5 + $0x38] sm:$0xff]  }
 0x404   :  { %v824_v6 = vpop.eup %823 }
 0x405   :  { %v260_v7 = vsel %vm247_vm3, %v824_v6, 0.0 }
 0x406   :  { %v826_v8 = vpop.eup %825  ;;  %261 = vadd.xlane.f32.xlu0 %v260_v7 }
 0x407   :  { %v263_v9 = vsel %vm247_vm3, %v826_v8, 0.0 }
 0x408   :  { %264 = vadd.xlane.f32.xlu1 %v263_v9 }
 0x419   :  { %321 = vrot.lane.b32.xlu1 %v139_v43, %s862_s17 }
 0x41c   :  { %272 = vrot.lane.b32.xlu0 %v138_v40, %s862_s17 }
 0x493   :  { %v262_v10 = vpop.xlane.xlu0 %261 }
 0x494   :  { %827 = vrcp.f32 %v262_v10  ;;  %v687_v10 = vld [vmem:[%s1080_s4] ss:$0 sm:$0xff] }
 0x495   :  { %v265_v11 = vpop.xlane.xlu1 %264 }
 0x496   :  { %829 = vrcp.f32 %v265_v11 }
 0x497   :  { %v273_v12 = vpop.permute.xlu0 %272 }
 0x498   :  { %v279_v13 = vsel %vm277_vm4, %v273_v12, 0 }
 0x499   :  { %751 = vmatpush3.bf16.msra.mxu1 %v279_v13  ;;  %v322_v14 = vpop.permute.xlu1 %321 }
 0x49a   :  { %v327_v16 = vsel %vm277_vm4, %v322_v14, 0  ;;  %762 = vmatprep.subr.bf16.mxu1 %v859_v15 }
 0x49b   :  { %757 = vmatpush3.bf16.msra.mxu0 %v327_v16 }
 0x49c   :  { %770 = vmatprep.subr.bf16.mxu0 %v859_v15 }
 0x49e   :  { %v828_v17 = vpop.eup %827 }
 0x49f   :  { %v268_v18 = vmul.f32 %v828_v17, %v824_v6 }
 0x4a0   :  { %v830_v19 = vpop.eup %829 }
 0x4a1   :  { %v269_v20 = vmul.f32 %v830_v19, %v826_v8  ;;  %v270_v21 = vpack.c.bf16 %v268_v18, %v268_v18 }
 0x4a3   :  { %753 = vmatmul.mubr.msk.bf16.vlgmr.msra.gmra.mrb[8].mxu1 %vm247_vm3, %v270_v21  ;;  %v271_v22 = vpack.c.bf16 %v269_v20, %v269_v20  ;;  %v817_v21 = vld [vmem:[%s1083_s7] sm:$0xff]  }
 0x4a4   :  { %766 = vmatprep.mubr.msk.bf16.mxu1 %vm860_vm1, %v859_v15  ;;  %763 = vmatpush3.bf16.msra.mxu1 %v807_v45 }
 0x4a5   :  { %759 = vmatmul.mubr.msk.bf16.vlgmr.msra.gmra.mrb[4].mxu0 %vm247_vm3, %v271_v22  ;;  %764 = vmatprep.subr.bf16.mxu1 %v859_v15  ;;  %v818_v22 = vld [vmem:[%s1083_s7 + $0x8] sm:$0xff]  }
 0x4a6   :  { %786 = vmatprep.mubr.msk.bf16.mxu0 %vm860_vm1, %v859_v15  ;;  %771 = vmatpush3.bf16.msra.mxu0 %v809_v47 }
 0x4a7   :  { %772 = vmatprep.subr.bf16.mxu0 %v859_v15 }
 0x4a8   :  { %765 = vmatpush3.bf16.msra.mxu1 %v808_v46 }
 0x4a9   :  { %790 = vmatprep.subr.bf16.mxu1 %v859_v15 }
 0x4aa   :  { %773 = vmatpush3.bf16.msra.mxu0 %v810_v48 }
 0x4ab   :  { %774 = vmatprep.subr.bf16.mxu0 %v859_v15 }
 0x4ae   :  { %775 = vmatpush3.bf16.msra.mxu0 %v811_v49 }
 0x4af   :  { %776 = vmatprep.subr.bf16.mxu0 %v859_v15 }
 0x4b2   :  { %777 = vmatpush3.bf16.msra.mxu0 %v812_v50 }
 0x4b3   :  { %778 = vmatprep.subr.bf16.mxu0 %v859_v15 }
 0x4b6   :  { %779 = vmatpush3.bf16.msra.mxu0 %v813_v51 }
 0x4b7   :  { %780 = vmatprep.subr.bf16.mxu0 %v859_v15 }
 0x4ba   :  { %781 = vmatpush3.bf16.msra.mxu0 %v814_v52 }
 0x4bb   :  { %782 = vmatprep.subr.bf16.mxu0 %v859_v15 }
 0x4be   :  { %783 = vmatpush3.bf16.msra.mxu0 %v815_v24 }
 0x4bf   :  { %784 = vmatprep.subr.bf16.mxu0 %v859_v15 }
 0x4c2   :  { %785 = vmatpush3.bf16.msra.mxu0 %v816_v26 }
 0x576   :  { %v315_v23 = vpop.f32.mrb[8].mxu1 }
 0x577   :  { %v986_v25 = vadd.f32 %v315_v23, %v919_v0  ;;  %v754_v27 = vpop.f32.mrb[9].mxu1  ;;  %v691_v23 = vld [vmem:[%s1082_s6] ss:$0 sm:$0xff]  ;;  %s835_s6 = scalar_lea.vmem %s670_s21, 256 }
 0x578   :  { %v318_v28 = vpop.f32.mrb[10].mxu1  ;;  %v363_v29 = vpop.f32.mrb[4].mxu0  ;;  %p836_p0 = scmp.ne.s32.totalorder %s670_s21, %s835_s6  ;;  %p841_p2 = scmp.lt.s32.totalorder %s835_s6, %s835_s6 }
 0x579   :  { %v989_v30 = vadd.f32 %v363_v29, %v924_v1  ;;  %v755_v31 = vpop.f32.mrb[11].mxu1  ;;  %v760_v32 = vpop.f32.mrb[5].mxu0  ;;  %v371_v33 = vsel %vm37_vm0, %v986_v25, 0.0 }
 0x57a   :  { %v366_v34 = vpop.f32.mrb[6].mxu0  ;;  %372 = vadd.xlane.f32.xlu1 %v371_v33  ;;  %p842_p3 = por %p841_p2, %p840_p1 }
 0x57b   :  { %v761_v35 = vpop.f32.mrb[7].mxu0  ;;  %v374_v36 = vsel %vm37_vm0, %v989_v30, 0.0 }
 0x57c   :  { %375 = vadd.xlane.f32.xlu0 %v374_v36  ;;  %v700_v36 = vld [vmem:[%s1084_s8] ss:$0 sm:$0xff]  ;;  %p843_p4 = pnand %p842_p3, %p836_p0 }
 0x607   :  { %v373_v0 = vpop.xlane.xlu1 %372 }
 0x608   :  { %v377_v37 = vmul.f32 0.03125, %v373_v0 }
 0x609   :  { %v376_v38 = vpop.xlane.xlu0 %375 }
 0x60a   :  { %v379_v39 = vsub.f32 %v986_v25, %v377_v37  ;;  %v378_v40 = vmul.f32 0.03125, %v376_v38 }
 0x60c   :  { %v380_v1 = vsub.f32 %v989_v30, %v378_v40  ;;  %v381_v41 = vmul.f32 %v379_v39, %v379_v39 }
 0x60e   :  { %v383_v42 = vsel %vm37_vm0, %v381_v41, 0.0  ;;  %v382_v43 = vmul.f32 %v380_v1, %v380_v1 }
 0x60f   :  { %384 = vadd.xlane.f32.xlu0 %v383_v42 }
 0x610   :  { %v386_v44 = vsel %vm37_vm0, %v382_v43, 0.0 }
 0x611   :  { %387 = vadd.xlane.f32.xlu1 %v386_v44 }
 0x69c   :  { %v385_v53 = vpop.xlane.xlu0 %384 }
 0x69d   :  { %v389_v54 = vmul.f32 0.03125, %v385_v53 }
 0x69e   :  { %v388_v55 = vpop.xlane.xlu1 %387 }
 0x69f   :  { %v391_v56 = vadd.f32 1e-05, %v389_v54  ;;  %v390_v57 = vmul.f32 0.03125, %v388_v55 }
 0x6a1   :  { %831 = vrsqrt.f32 %v391_v56  ;;  %v392_v58 = vadd.f32 1e-05, %v390_v57 }
 0x6a3   :  { %833 = vrsqrt.f32 %v392_v58 }
 0x6ab   :  { %v832_v62 = vpop.eup %831 }
 0x6ac   :  { %v395_v63 = vmul.f32 %v832_v62, %v379_v39 }
 0x6ad   :  { %v834_v2 = vpop.eup %833 }
 0x6ae   :  { %v401_v3 = vmul.f32 %v400_v60, %v395_v63  ;;  %v396_v4 = vmul.f32 %v834_v2, %v380_v1 }
 0x6b0   :  { %v402_v6 = vmul.f32 %v400_v60, %v396_v4  ;;  %v407_v7 = vadd.f32 %v406_v5, %v401_v3 }
 0x6b2   :  { %v408_v8 = vadd.f32 %v406_v5, %v402_v6 }
 0x6b4   :  { %v409_v9 = vpack.c.bf16 %v408_v8, %v407_v7 }
 0x6b6   :  { %767 = vmatmul.mubr.msk.bf16.vlgmr.msra.gmra.mrb[12].mxu1 %vm37_vm0, %v409_v9 }
 0x6b7   :  { %794 = vmatprep.mubr.msk.bf16.mxu1 %vm860_vm1, %v859_v15  ;;  %791 = vmatpush3.bf16.msra.mxu1 %v817_v21 }
 0x6b8   :  { %792 = vmatprep.subr.bf16.mxu1 %v859_v15 }
 0x6bb   :  { %793 = vmatpush3.bf16.msra.mxu1 %v818_v22 }
 0x789   :  { %v470_v11 = vpop.f32.mrb[12].mxu1 }
 0x78a   :  { %v471_v12 = vadd.f32 %v687_v10, %v470_v11  ;;  %v768_v13 = vpop.f32.mrb[13].mxu1 }
 0x78b   :  { %v473_v14 = vpop.f32.mrb[14].mxu1 }
 0x78c   :  { %v474_v16 = vadd.f32 %v687_v10, %v473_v14  ;;  %v769_v17 = vpop.f32.mrb[15].mxu1  ;;  %v477_v18 = vmax.f32 %v471_v12, 0.0 }
 0x78e   :  { %v478_v19 = vmax.f32 %v474_v16, 0.0 }
 0x790   :  { %v479_v20 = vpack.c.bf16 %v478_v19, %v477_v18 }
 0x792   :  { %787 = vmatmul.mubr.bf16.vlgmr.msra.gmra.mrb[8].mxu0 %v479_v20 }
 0x865   :  { %v585_v27 = vpop.f32.mrb[8].mxu0 }
 0x866   :  { %v586_v28 = vadd.f32 %v691_v23, %v585_v27  ;;  %v788_v29 = vpop.f32.mrb[9].mxu0 }
 0x867   :  { %v588_v31 = vpop.f32.mrb[10].mxu0 }
 0x868   :  { %v589_v32 = vadd.f32 %v691_v23, %v588_v31  ;;  %v789_v33 = vpop.f32.mrb[11].mxu0  ;;  %v592_v34 = vadd.f32 %v586_v28, %v986_v25 }
 0x86a   :  { %v593_v35 = vadd.f32 %v589_v32, %v989_v30 }
 0x86c   :  { %v594_v15 = vpack.c.bf16 %v593_v35, %v592_v34 }
 0x86e   :  { %795 = vmatmul.mubr.msk.bf16.vlgmr.msra.gmra.mrb[16].mxu1 %vm37_vm0, %v594_v15 }
 0x941   :  { %v655_v0 = vpop.f32.mrb[16].mxu1 }
 0x942   :  { %v656_v37 = vadd.f32 %v700_v36, %v655_v0  ;;  %v796_v38 = vpop.f32.mrb[17].mxu1 }
 0x943   :  { %v658_v39 = vpop.f32.mrb[18].mxu1 }
 0x944   :  { %662 = vst [vmem:[#allocation2] sm:$0xff] %v656_v37  ;;  %v659_v40 = vadd.f32 %v700_v36, %v658_v39  ;;  %v797_v1 = vpop.f32.mrb[19].mxu1 }
 0x946   :  { %663 = vst [vmem:[#allocation2 + $0x8] sm:$0xff] %v659_v40 }
 0x947   :  { %846 = shalt.err (!%p843_p4)
}
 0x948   :  { %s847_s23 = scalar_lea.hbm %s1085_s9, 256 }
 0x949   :  { %p848_p5 = scmp.ne.s32.totalorder %s1085_s9, %s847_s23  ;;  %p851_p6 = scmp.lt.u32.totalorder %s847_s23, %s1085_s9 }
 0x94b   :  { %p853_p7 = pnand %p851_p6, %p848_p5 }
 0x94d   :  { %856 = shalt.err (!%p853_p7)
}
 0x94e   :  { %s864_s3 = smov 128   ;;  %s865_s28 = smov 8  }
 0x94f   :  { %675 = dma.vmem_to_hbm [thread:$0]  %s670_s21, 256, %s1085_s9, [#allocation3], %s864_s3, %s864_s3, %s865_s28  }
 0x950   :  { %857 = dma.done.wait [#allocation3], 256  }
 0x951   :  { %858 = vsyncadd [#allocation3], 4294967040 }
 0x952   :  { %679 = vsyncpa [#allocation3], 1 }

</bundles_post_ra>
